<compile_context>
chip_gen: v7x
topology: tpu7x:2x2x1
jax: 0.10.0
libtpu: 0.0.40
codegen_flags: <defaults>
</compile_context>

<pallas_src>
import functools

import jax
import jax.numpy as jnp
from jax import lax
from jax.experimental import pallas as pl
from jax.experimental.pallas import tpu as pltpu


def _round_up(x, m):
    return ((x + m - 1) // m) * m


def _vmem_budget_and_limit():
    """Generation-aware VMEM budget (for tile sizing) and Mosaic scoped limit."""
    try:
        cap = int(pltpu.get_tpu_info().vmem_capacity_bytes)
    except Exception:
        cap = 64 << 20                    # conservative default ~= v7x physical
    if cap >= (128 << 20):                # v5e / v6e: 128 MiB physical VMEM
        return 80 << 20, 100 << 20
    return 40 << 20, 48 << 20             # v7x (64 MiB physical) and smaller


def _choose_tiles(M, B, K, Nc, budget_bytes):
    """Pick (tm, tb): mode tile and batch tile for f32, double-buffered blocks."""
    bpe = 4  # float32
    # Mode tile: 8/16/32, preferring one that divides M (no padded modes),
    # shrunk if the double-buffered weight slice would eat > half the budget.
    if M < 8:
        tm = M
    else:
        tm = 8
        for cand in (32, 16):
            if M % cand == 0:
                tm = cand
                break
        while tm > 8 and 2 * tm * K * Nc * bpe > budget_bytes // 2:
            tm //= 2
    tm = max(tm, 1)
    w_bytes = 2 * tm * K * Nc * bpe
    # Batch tile: largest multiple of 8 whose double-buffered x/out blocks fit
    # in the remaining budget (best-effort floor of 8 if weights already blow it).
    per_row = 2 * tm * (K + Nc) * bpe
    remaining = max(budget_bytes - w_bytes, per_row * 8)
    tb = max(8, (remaining // per_row) // 8 * 8)
    tb = int(min(tb, _round_up(B, 8)))
    return tm, tb


def _mode_mix_kernel(x_ref, w_ref, o_ref):
    """Per-mode-tile real matmul on the MXU.

    x_ref: (tm, tb, 2*Ci)   packed [Re | Im] input spectra for one (mode, batch) tile
    w_ref: (tm, 2*Ci, 2*Co) packed [[wr, wi], [-wi, wr]] weights for the mode tile
    o_ref: (tm, tb, 2*Co)   packed [Re | Im] mixed output spectra
    """
    o_ref[...] = lax.dot_general(
        x_ref[...],
        w_ref[...],
        # contract the packed-input-channel axis, batch over modes
        dimension_numbers=(((2,), (1,)), ((0,), (0,))),
        preferred_element_type=jnp.float32,
    ).astype(o_ref.dtype)


def _mode_mix(x_packed, w_packed, tm, tb, vmem_limit_bytes):
    """out[m, b, :] = x_packed[m, b, :] @ w_packed[m, :, :]  (real, f32 accum)."""
    Mp, Bp, K = x_packed.shape
    _, _, Nc = w_packed.shape

    return pl.pallas_call(
        _mode_mix_kernel,
        out_shape=jax.ShapeDtypeStruct((Mp, Bp, Nc), jnp.float32),
        grid_spec=pltpu.PrefetchScalarGridSpec(
            num_scalar_prefetch=0,
            grid=(Mp // tm, Bp // tb),
            in_specs=[
                # x: a (mode, batch) tile; minor dim is the full packed channel
                # axis (no HBM lane padding; full-dim blocks are legal).
                pl.BlockSpec((tm, tb, K), lambda m, b: (m, b, 0)),
                # weights: per-mode-tile slice, constant across the batch axis
                # (re-DMA'd only when the mode block index changes).
                pl.BlockSpec((tm, K, Nc), lambda m, b: (m, 0, 0)),
            ],
            out_specs=pl.BlockSpec((tm, tb, Nc), lambda m, b: (m, b, 0)),
        ),
        compiler_params=pltpu.CompilerParams(
            dimension_semantics=("parallel", "parallel"),  # megacore over modes/batch
            vmem_limit_bytes=vmem_limit_bytes,
        ),
    )(x_packed, w_packed)


@functools.partial(jax.jit, static_argnames=("modes1",))
def spectral_conv1d(x, w_real, w_imag, modes1):
    """Forward pass of SpectralConv1d.

    x:      (B, Ci, N)       float32
    w_real: (Ci, Co, modes1) float32  (real part of weights1)
    w_imag: (Ci, Co, modes1) float32  (imag part of weights1)
    returns (B, Co, N)       float32
    """
    B, Ci, N = x.shape
    Co = w_real.shape[1]
    Nf = N // 2 + 1
    M = modes1
    assert M <= Nf, "modes1 must be <= N//2 + 1"

    K = 2 * Ci                     # packed [Re | Im] input-channel axis
    Nc = 2 * Co                    # packed [Re | Im] output-channel axis

    budget, vmem_limit = _vmem_budget_and_limit()
    tm, tb = _choose_tiles(M, B, K, Nc, budget)
    Mp = _round_up(M, tm)
    Bp = _round_up(B, tb)

    # ---- JAX glue: forward FFT + pack into the per-mode real layout ---------
    x_ft = jnp.fft.rfft(x.astype(jnp.float32), axis=-1)   # (B, Ci, Nf) complex64
    x_m = x_ft[:, :, :M]                                   # keep low modes only
    # (M, B, 2*Ci): minor axis = packed [Re | Im] input channels (not lane-padded)
    x_packed = jnp.concatenate([jnp.real(x_m), jnp.imag(x_m)], axis=1)
    x_packed = x_packed.transpose(2, 0, 1)
    x_packed = jnp.pad(x_packed, ((0, Mp - M), (0, Bp - B), (0, 0)))

    wr = w_real.astype(jnp.float32).transpose(2, 0, 1)     # (M, Ci, Co)
    wi = w_imag.astype(jnp.float32).transpose(2, 0, 1)
    # (M, 2*Ci, 2*Co): real-valued encoding of the per-mode complex matmul
    w_packed = jnp.concatenate(
        [jnp.concatenate([wr, wi], axis=2),
         jnp.concatenate([-wi, wr], axis=2)], axis=1)
    w_packed = jnp.pad(w_packed, ((0, Mp - M), (0, 0), (0, 0)))

    # ---- Pallas kernel: per-mode-tile MXU matmul -----------------------------
    out_packed = _mode_mix(x_packed, w_packed, tm, tb, vmem_limit)  # (Mp, Bp, 2*Co)

    # ---- JAX glue: unpack, zero high modes, inverse FFT ----------------------
    out_c = out_packed[:M, :B, :Co] + 1j * out_packed[:M, :B, Co:]
    out_c = out_c.transpose(1, 2, 0)                        # (B, Co, M) complex64
    out_ft = jnp.zeros((B, Co, Nf), dtype=jnp.complex64).at[:, :, :M].set(out_c)
    return jnp.fft.irfft(out_ft, n=N, axis=-1)              # (B, Co, N) float32


if __name__ == "__main__":
    key = jax.random.PRNGKey(0)
    kx, kr, ki = jax.random.split(key, 3)

    B, Ci, Co, N, modes1 = 2, 4, 4, 16, 8
    x = jax.random.normal(kx, (B, Ci, N), dtype=jnp.float32)
    scale = 1.0 / (Ci * Co)
    w_real = scale * jax.random.uniform(kr, (Ci, Co, modes1), dtype=jnp.float32)
    w_imag = scale * jax.random.uniform(ki, (Ci, Co, modes1), dtype=jnp.float32)

    y = spectral_conv1d(x, w_real, w_imag, modes1)
    y = jax.block_until_ready(y)

    # Pure-JAX reference (mirrors the PyTorch forward exactly).
    x_ft_ref = jnp.fft.rfft(x, axis=-1)
    w_c = w_real + 1j * w_imag
    out_ft_ref = jnp.zeros((B, Co, N // 2 + 1), dtype=jnp.complex64)
    out_ft_ref = out_ft_ref.at[:, :, :modes1].set(
        jnp.einsum('bix,iox->box', x_ft_ref[:, :, :modes1], w_c))
    y_ref = jnp.fft.irfft(out_ft_ref, n=N, axis=-1)

    err = float(jnp.max(jnp.abs(y - y_ref)))
    if not jnp.allclose(y, y_ref, atol=1e-4, rtol=1e-4):
        raise AssertionError(f"mismatch vs reference, max |err| = {err}")
    print("KERNEL_OK")
</pallas_src>

<mosaic_0001>
module attributes {stable_mosaic.version = 11 : i64} {
  func.func @_mode_mix_kernel(%arg0: i32, %arg1: i32, %arg2: memref<8x8x8xf32, #tpu.memory_space<vmem>>, %arg3: memref<8x8x8xf32, #tpu.memory_space<vmem>>, %arg4: memref<8x8x8xf32, #tpu.memory_space<vmem>>) attributes {dimension_semantics = [#tpu.dimension_semantics<parallel>, #tpu.dimension_semantics<parallel>], iteration_bounds = array<i64: 1, 1>, scalar_prefetch = 0 : i64, scratch_operands = 0 : i64, tpu.core_type = #tpu.core_type<tc>, window_params = [{transform_indices = @transform_0, window_bounds = array<i64: 8, 8, 8>}, {transform_indices = @transform_1, window_bounds = array<i64: 8, 8, 8>}, {transform_indices = @transform_2, window_bounds = array<i64: 8, 8, 8>}]} {
    %c0 = arith.constant 0 : index
    %c0_0 = arith.constant 0 : index
    %c0_1 = arith.constant 0 : index
    %0 = vector.load %arg2[%c0, %c0_0, %c0_1] : memref<8x8x8xf32, #tpu.memory_space<vmem>>, vector<8x8x8xf32>
    %c0_2 = arith.constant 0 : index
    %c0_3 = arith.constant 0 : index
    %c0_4 = arith.constant 0 : index
    %1 = vector.load %arg3[%c0_2, %c0_3, %c0_4] : memref<8x8x8xf32, #tpu.memory_space<vmem>>, vector<8x8x8xf32>
    %cst = arith.constant dense<0.000000e+00> : vector<8x8x8xf32>
    %2 = tpu.matmul %0, %1, %cst {dimension_numbers = #tpu.dot_dimension_numbers<[2], [1], [1], [2], [0, 0, 0, 1, 1, 2], [0], [0]>} : vector<8x8x8xf32>, vector<8x8x8xf32>, vector<8x8x8xf32> -> vector<8x8x8xf32>
    %c0_5 = arith.constant 0 : index
    %c0_6 = arith.constant 0 : index
    %c0_7 = arith.constant 0 : index
    %3 = vector.load %arg4[%c0_5, %c0_6, %c0_7] : memref<8x8x8xf32, #tpu.memory_space<vmem>>, vector<8x8x8xf32>
    tpu.vector_store %arg4[%c0_5, %c0_6, %c0_7], %2 {strides = array<i32>} : memref<8x8x8xf32, #tpu.memory_space<vmem>>, vector<8x8x8xf32>,
    return
  }
  func.func @transform_0(%arg0: i32, %arg1: i32) -> (i32, i32, i32) {
    %c0_i32 = arith.constant 0 : i32
    %c0_i32_0 = arith.constant 0 : i32
    return %arg0, %arg1, %c0_i32 : i32, i32, i32
  }
  func.func @transform_1(%arg0: i32, %arg1: i32) -> (i32, i32, i32) {
    %c0_i32 = arith.constant 0 : i32
    %c0_i32_0 = arith.constant 0 : i32
    %c0_i32_1 = arith.constant 0 : i32
    return %arg0, %c0_i32, %c0_i32_0 : i32, i32, i32
  }
  func.func @transform_2(%arg0: i32, %arg1: i32) -> (i32, i32, i32) {
    %c0_i32 = arith.constant 0 : i32
    %c0_i32_0 = arith.constant 0 : i32
    return %arg0, %arg1, %c0_i32 : i32, i32, i32
  }
}

</mosaic_0001>

<bundles_post_ra>
// kernel: reverse.1
= control target key start
LH: loop header
LB: loop body
LE: loop exit
PB: predicated region body
PF: predicated region fallthrough
CT: control target
= control target key end

     0   :  { %s92_s0 = inlined_call_operand.vmem [shape: f32[2,4,7], index: 0, kind: input, shape index: {}]   ;;  %s93_s1 = inlined_call_operand.vmem [shape: f32[2,4,7], index: 1, kind: output, shape index: {}]  }
   0x1   :  { %v28_v0 = vld [vmem:[%s92_s0 + $0xc] sm:$0x3]  ;;  %v29_v1 = vld [vmem:[%s92_s0 + $0xa] sm:$0x3]  ;;  %v31_v2 = vld [vmem:[%s92_s0 + $0x8] sm:$0x3] }
   0x2   :  { %4 = vst [vmem:[%s93_s1] sm:$0x3] %v28_v0  ;;  %30 = vst [vmem:[%s93_s1 + $0x2] sm:$0x3] %v29_v1  ;;  %v33_v3 = vld [vmem:[%s92_s0 + $0x6] sm:$0x3] }
   0x3   :  { %32 = vst [vmem:[%s93_s1 + $0x4] sm:$0x3] %v31_v2  ;;  %v35_v4 = vld [vmem:[%s92_s0 + $0x4] sm:$0x3]  ;;  %v37_v5 = vld [vmem:[%s92_s0 + $0x2] sm:$0x3] }
   0x4   :  { %34 = vst [vmem:[%s93_s1 + $0x6] sm:$0x3] %v33_v3  ;;  %36 = vst [vmem:[%s93_s1 + $0x8] sm:$0x3] %v35_v4  ;;  %v25_v6 = vld [vmem:[%s92_s0] sm:$0x3] }
   0x5   :  { %38 = vst [vmem:[%s93_s1 + $0xa] sm:$0x3] %v37_v5  ;;  %39 = vst [vmem:[%s93_s1 + $0xc] sm:$0x3] %v25_v6 }

// kernel: spectral_conv1d.1
= control target key start
LH: loop header
LB: loop body
LE: loop exit
PB: predicated region body
PF: predicated region fallthrough
CT: control target
= control target key end

     0   :  { %v690_v0 = vmov 0.0   ;;  %vm27_vm0 = vcmask 64512   ;;  %vm691_vm1 = vmmov 0   ;;  %s803_s1 = inlined_call_operand.vmem [shape: f32[8,8,8], index: 1, kind: input, shape index: {}]   ;;  %s804_s0 = inlined_call_operand.vmem [shape: f32[8,8,8], index: 0, kind: input, shape index: {}]   ;;  %s805_s2 = inlined_call_operand.vmem [shape: f32[8,8,8], index: 2, kind: output, shape index: {}]  }
   0x1   :  { %648 = vmatprep.subr.mxu0 %v690_v0  ;;  %653 = vmatprep.subr.mxu1 %v690_v0  ;;  %v19_v1 = vld [vmem:[%s803_s1] sm:$0xff]  ;;  %v20_v2 = vld [vmem:[%s803_s1 + $0x8] sm:$0xff]  ;;  %v21_v5 = vld [vmem:[%s803_s1 + $0x10] sm:$0xff] }
   0x2   :  { %v11_v3 = vld [vmem:[%s804_s0] sm:$0xff]  ;;  %649 = vmatpush3.msra.mxu0 %v19_v1  ;;  %650 = vmatprep.mubr.msk.f32.mxu0 %vm691_vm1, %v690_v0  ;;  %v12_v4 = vld [vmem:[%s804_s0 + $0x8] sm:$0xff]  ;;  %v22_v6 = vld [vmem:[%s803_s1 + $0x18] sm:$0xff] }
   0x3   :  { %654 = vmatpush3.msra.mxu1 %v20_v2  ;;  %655 = vmatprep.mubr.msk.f32.mxu1 %vm691_vm1, %v690_v0  ;;  %v13_v7 = vld [vmem:[%s804_s0 + $0x10] sm:$0xff]  ;;  %v14_v8 = vld [vmem:[%s804_s0 + $0x18] sm:$0xff]  ;;  %v23_v9 = vld [vmem:[%s803_s1 + $0x20] sm:$0xff] }
   0x4   :  { %651 = vmatmul.mubr.msk.f32.vlgmr.msra.gmra.mrb[0].mxu0 %vm27_vm0, %v11_v3  ;;  %656 = vmatmul.mubr.msk.f32.vlgmr.msra.gmra.mrb[0].mxu1 %vm27_vm0, %v12_v4  ;;  %v24_v10 = vld [vmem:[%s803_s1 + $0x28] sm:$0xff]  ;;  %v15_v11 = vld [vmem:[%s804_s0 + $0x20] sm:$0xff]  ;;  %v25_v13 = vld [vmem:[%s803_s1 + $0x30] sm:$0xff] }
   0x5   :  { %658 = vmatprep.subr.mxu0 %v690_v0  ;;  %663 = vmatprep.subr.mxu1 %v690_v0  ;;  %v16_v12 = vld [vmem:[%s804_s0 + $0x28] sm:$0xff]  ;;  %v26_v14 = vld [vmem:[%s803_s1 + $0x38] sm:$0xff]  ;;  %v17_v15 = vld [vmem:[%s804_s0 + $0x30] sm:$0xff] }
   0x6   :  { %659 = vmatpush3.msra.mxu0 %v21_v5  ;;  %664 = vmatpush3.msra.mxu1 %v22_v6  ;;  %v18_v16 = vld [vmem:[%s804_s0 + $0x38] sm:$0xff] }
   0x7   :  { %660 = vmatprep.mubr.msk.f32.mxu0 %vm691_vm1, %v690_v0  ;;  %665 = vmatprep.mubr.msk.f32.mxu1 %vm691_vm1, %v690_v0 }
   0x8   :  { %661 = vmatmul.mubr.msk.f32.vlgmr.msra.gmra.mrb[2].mxu0 %vm27_vm0, %v13_v7  ;;  %666 = vmatmul.mubr.msk.f32.vlgmr.msra.gmra.mrb[2].mxu1 %vm27_vm0, %v14_v8 }
   0x9   :  { %668 = vmatprep.subr.mxu0 %v690_v0  ;;  %673 = vmatprep.subr.mxu1 %v690_v0 }
   0xa   :  { %669 = vmatpush3.msra.mxu0 %v23_v9  ;;  %674 = vmatpush3.msra.mxu1 %v24_v10 }
   0xb   :  { %670 = vmatprep.mubr.msk.f32.mxu0 %vm691_vm1, %v690_v0  ;;  %675 = vmatprep.mubr.msk.f32.mxu1 %vm691_vm1, %v690_v0 }
   0xc   :  { %671 = vmatmul.mubr.msk.f32.vlgmr.msra.gmra.mrb[4].mxu0 %vm27_vm0, %v15_v11  ;;  %676 = vmatmul.mubr.msk.f32.vlgmr.msra.gmra.mrb[4].mxu1 %vm27_vm0, %v16_v12 }
   0xd   :  { %678 = vmatprep.subr.mxu0 %v690_v0  ;;  %683 = vmatprep.subr.mxu1 %v690_v0 }
   0xe   :  { %679 = vmatpush3.msra.mxu0 %v25_v13  ;;  %684 = vmatpush3.msra.mxu1 %v26_v14 }
   0xf   :  { %680 = vmatprep.mubr.msk.f32.mxu0 %vm691_vm1, %v690_v0  ;;  %685 = vmatprep.mubr.msk.f32.mxu1 %vm691_vm1, %v690_v0 }
  0x10   :  { %681 = vmatmul.mubr.msk.f32.vlgmr.msra.gmra.mrb[6].mxu0 %vm27_vm0, %v17_v15  ;;  %686 = vmatmul.mubr.msk.f32.vlgmr.msra.gmra.mrb[6].mxu1 %vm27_vm0, %v18_v16 }
  0xd7   :  { %v97_v17 = vpop.f32.mrb[0].mxu0  ;;  %v170_v18 = vpop.f32.mrb[0].mxu1 }
  0xd8   :  { %612 = vst.msk [vmem:[%s805_s2] sm:$0xff] %vm27_vm0, %v97_v17  ;;  %613 = vst.msk [vmem:[%s805_s2 + $0x8] sm:$0xff] %vm27_vm0, %v170_v18  ;;  %v652_v19 = vpop.f32.mrb[1].mxu0  ;;  %v657_v20 = vpop.f32.mrb[1].mxu1 }
  0xdb   :  { %v243_v21 = vpop.f32.mrb[2].mxu0  ;;  %v316_v22 = vpop.f32.mrb[2].mxu1 }
  0xdc   :  { %614 = vst.msk [vmem:[%s805_s2 + $0x10] sm:$0xff] %vm27_vm0, %v243_v21  ;;  %615 = vst.msk [vmem:[%s805_s2 + $0x18] sm:$0xff] %vm27_vm0, %v316_v22  ;;  %v662_v23 = vpop.f32.mrb[3].mxu0  ;;  %v667_v24 = vpop.f32.mrb[3].mxu1 }
  0xdf   :  { %v389_v25 = vpop.f32.mrb[4].mxu0  ;;  %v462_v26 = vpop.f32.mrb[4].mxu1 }
  0xe0   :  { %616 = vst.msk [vmem:[%s805_s2 + $0x20] sm:$0xff] %vm27_vm0, %v389_v25  ;;  %617 = vst.msk [vmem:[%s805_s2 + $0x28] sm:$0xff] %vm27_vm0, %v462_v26  ;;  %v672_v27 = vpop.f32.mrb[5].mxu0  ;;  %v677_v28 = vpop.f32.mrb[5].mxu1 }
  0xe3   :  { %v535_v29 = vpop.f32.mrb[6].mxu0  ;;  %v608_v30 = vpop.f32.mrb[6].mxu1 }
  0xe4   :  { %618 = vst.msk [vmem:[%s805_s2 + $0x30] sm:$0xff] %vm27_vm0, %v535_v29  ;;  %619 = vst.msk [vmem:[%s805_s2 + $0x38] sm:$0xff] %vm27_vm0, %v608_v30  ;;  %v682_v31 = vpop.f32.mrb[7].mxu0  ;;  %v687_v32 = vpop.f32.mrb[7].mxu1 }

</bundles_post_ra>
